<compile_context>
chip_gen: v7x
topology: tpu7x:2x2x1
jax: 0.10.0
libtpu: 0.0.40
codegen_flags: <defaults>
</compile_context>

<pallas_src>
from functools import partial

import jax
import jax.numpy as jnp
from jax.experimental import pallas as pl
from jax.experimental.pallas import tpu as pltpu


def gat_fused_kernel(A_ref, x_ref, omd_ref, W_ref, ac_ref, ab_ref, o_ref,
                     *, n_heads, n_nodes, f_out):
    hf = n_heads * f_out

    A = A_ref[0].astype(jnp.float32)   # (N, N)  0/1 adjacency mask (shipped as bf16)
    x_aug = x_ref[0]                   # (N, F_in+1), last column == 1
    omd = omd_ref[0]                   # (N, 1)  (1 - diag(A)) + 1e-6, folded in wrapper
    W_aug = W_ref[...]                 # (F_in+1, HF+1)
    a_comb = ac_ref[...]               # (HF+1, 2H)

    # Head-fused projection.  The ones-generator column makes Wh_aug[:, HF] == 1.0, so the
    # per-head `masked @ Wh_aug` matmul below also produces the softmax row sums on the MXU.
    Wh_aug = jnp.dot(x_aug, W_aug, preferred_element_type=jnp.float32)    # (N, HF+1)

    # src/dst attention terms for all heads in one tiny matmul:
    #   sd[:, h] = Wh_h . a_src_h ,  sd[:, H + h] = Wh_h . a_dst_h
    sd = jnp.dot(Wh_aug, a_comb, preferred_element_type=jnp.float32)      # (N, 2H)

    for h in range(n_heads):                                 # static unroll, H is small
        src_b = sd[:, h:h + 1] + ab_ref[h]                   # (N, 1)  bias folded here
        dst_col = sd[:, n_heads + h:n_heads + h + 1]         # (N, 1)
        dst_row = dst_col.reshape(1, n_nodes)                # (1, N)  single relayout

        # Row max of leaky(e): leaky_relu is monotone increasing, so
        #   max_j leaky(s_i + d_j + b) == leaky(s_i + b + max_j d_j)
        # -> a length-N max instead of an (N,N) reduce (matches the reference, which takes
        #    the max over all columns before masking).
        m = jnp.max(dst_row, axis=-1, keepdims=True)         # (1, 1)
        rmax = src_b + m
        rmax = jnp.maximum(rmax, 0.2 * rmax)                 # (N, 1)

        # e_ij = leaky_relu(s_i + d_j + b), slope 0.2
        e = src_b + dst_row                                  # (N, N)
        a = jnp.maximum(e, 0.2 * e)

        # masked exps (A is strictly 0/1, so the trailing `* A` of the reference is a no-op)
        p = jnp.exp(a - rmax) * A                            # (N, N)

        # One MXU pass: columns [h*F_out, (h+1)*F_out) = masked @ Wh_h,
        #               column HF                       = row sums of `p`.
        res = jnp.dot(p, Wh_aug, preferred_element_type=jnp.float32)      # (N, HF+1)
        sums = res[:, hf:hf + 1] + omd                       # (N, 1)
        out_h = res[:, h * f_out:(h + 1) * f_out] * pl.reciprocal(sums, approx=False)

        # direct store into the 'concat' layout slice (no concatenate, no live accumulation)
        o_ref[0, :, h * f_out:(h + 1) * f_out] = out_h.astype(o_ref.dtype)


def multihead_gat(A, x, W, aw, ab):
    """Multi-head GAT with 'concat' aggregation. Returns (B, N, H * F_out)."""
    H, F_in, F_out = W.shape
    B, N, _ = x.shape
    HF = H * F_out

    # Head-fused projection weight, augmented with a "ones generator" column so that
    # Wh_aug = x_aug @ W_aug carries a constant-1 last column (used for MXU row sums).
    W_all = jnp.transpose(W, (1, 0, 2)).reshape(F_in, HF).astype(jnp.float32)
    W_aug = jnp.zeros((F_in + 1, HF + 1), jnp.float32)
    W_aug = W_aug.at[:F_in, :HF].set(W_all)
    W_aug = W_aug.at[F_in, HF].set(1.0)
    x_aug = jnp.concatenate(
        [x.astype(jnp.float32), jnp.ones((B, N, 1), jnp.float32)], axis=-1)

    # Block-diagonal packing of per-head attention weights: (HF+1, 2H).  The extra zero row
    # makes the appended ones column of Wh_aug inert for the logit matmul.
    a_src = aw[:, 0, :F_out].astype(jnp.float32)                        # (H, F_out)
    a_dst = aw[:, 0, F_out:].astype(jnp.float32)                        # (H, F_out)
    eye_h = jnp.eye(H, dtype=jnp.float32)
    a_src_mat = (a_src[:, :, None] * eye_h[:, None, :]).reshape(HF, H)
    a_dst_mat = (a_dst[:, :, None] * eye_h[:, None, :]).reshape(HF, H)
    a_comb = jnp.concatenate([a_src_mat, a_dst_mat], axis=1)            # (HF, 2H)
    a_comb = jnp.concatenate([a_comb, jnp.zeros((1, 2 * H), jnp.float32)], axis=0)

    # (1 - diag(A)) + eps precomputed once in the wrapper (no per-step VPU work).
    diagA = jnp.diagonal(A, axis1=1, axis2=2).astype(jnp.float32)       # (B, N)
    omd = ((1.0 - diagA) + 1e-6)[..., None]                             # (B, N, 1)

    kernel = partial(gat_fused_kernel, n_heads=H, n_nodes=N, f_out=F_out)
    out = pl.pallas_call(
        kernel,
        out_shape=jax.ShapeDtypeStruct((B, N, HF), jnp.float32),
        grid=(B,),
        in_specs=[
            pl.BlockSpec((1, N, N), lambda b: (b, 0, 0)),            # A (bf16, 0/1 mask)
            pl.BlockSpec((1, N, F_in + 1), lambda b: (b, 0, 0)),     # x (ones col appended)
            pl.BlockSpec((1, N, 1), lambda b: (b, 0, 0)),            # (1 - diag(A)) + eps
            pl.BlockSpec((F_in + 1, HF + 1), lambda b: (0, 0)),      # fused projection W
            pl.BlockSpec((HF + 1, 2 * H), lambda b: (0, 0)),         # fused attention W
            pl.BlockSpec(memory_space=pltpu.MemorySpace.SMEM),       # attention biases (H,)
        ],
        out_specs=pl.BlockSpec((1, N, HF), lambda b: (b, 0, 0)),
        compiler_params=pltpu.CompilerParams(
            dimension_semantics=("parallel",)),                      # batch over the 2 TCs
    )(A.astype(jnp.bfloat16), x_aug, omd,
      W_aug, a_comb, ab.astype(jnp.float32))
    return out


def multihead_gat_reference(A, x, W, aw, ab):
    """Pure-JAX reference mirroring the PyTorch forward, for validation."""
    H, F_in, F_out = W.shape
    Af = A.astype(jnp.float32)
    heads = []
    for h in range(H):
        Wh = jnp.einsum('bnf,fo->bno', x, W[h])                       # (B,N,F_out)
        src = jnp.einsum('bno,o->bn', Wh, aw[h, 0, :F_out])           # (B,N)
        dst = jnp.einsum('bno,o->bn', Wh, aw[h, 0, F_out:])           # (B,N)
        e = src[:, :, None] + dst[:, None, :] + ab[h]                 # (B,N,N)
        e = jnp.where(e >= 0, e, 0.2 * e)
        e = e - jnp.max(e, axis=-1, keepdims=True)
        exps = jnp.exp(e)
        masked = exps * Af
        sums = jnp.sum(masked, axis=2, keepdims=True)
        diag = jnp.diagonal(Af, axis1=1, axis2=2)[:, :, None]
        sums = sums + (1.0 - diag) + 1e-6
        attn = masked / sums * Af
        heads.append(jnp.einsum('bij,bjo->bio', attn, Wh))
    return jnp.concatenate(heads, axis=-1)


if __name__ == "__main__":
    B, N, F_IN, F_OUT, H = 2, 8, 16, 8, 3

    key = jax.random.PRNGKey(0)
    k_x, k_a, k_w, k_aw, k_ab = jax.random.split(key, 5)

    # inputs
    x = jax.random.normal(k_x, (B, N, F_IN), dtype=jnp.float32)
    A = (jax.random.uniform(k_a, (B, N, N)) < 0.5).astype(jnp.float32)
    eye = jnp.eye(N, dtype=jnp.float32)[None]
    A = jnp.maximum(A, eye)                     # add self loops

    # parameters (deterministic, matching the torch module's shapes)
    xavier_std = (2.0 / (F_IN + F_OUT)) ** 0.5
    W = jax.random.normal(k_w, (H, F_IN, F_OUT), dtype=jnp.float32) * xavier_std
    lin_bound = 1.0 / (2 * F_OUT) ** 0.5
    aw = jax.random.uniform(k_aw, (H, 1, 2 * F_OUT), dtype=jnp.float32,
                            minval=-lin_bound, maxval=lin_bound)
    ab = jax.random.uniform(k_ab, (H,), dtype=jnp.float32,
                            minval=-lin_bound, maxval=lin_bound)

    out = multihead_gat(A, x, W, aw, ab)
    out = jax.block_until_ready(out)

    ref = multihead_gat_reference(A, x, W, aw, ab)
    assert out.shape == (B, N, H * F_OUT), out.shape
    assert jnp.allclose(out, ref, atol=2e-2, rtol=2e-2), \
        f"max abs err = {float(jnp.max(jnp.abs(out - ref)))}"

    print("KERNEL_OK")
</pallas_src>

<mosaic_0001>
module attributes {stable_mosaic.version = 11 : i64} {
  func.func @gat_fused_kernel(%arg0: i32, %arg1: memref<1x8x8xbf16, #tpu.memory_space<vmem>>, %arg2: memref<1x8x17xf32, #tpu.memory_space<vmem>>, %arg3: memref<1x8x1xf32, #tpu.memory_space<vmem>>, %arg4: memref<17x25xf32, #tpu.memory_space<vmem>>, %arg5: memref<25x6xf32, #tpu.memory_space<vmem>>, %arg6: memref<3xf32, #tpu.memory_space<smem>>, %arg7: memref<1x8x24xf32, #tpu.memory_space<vmem>>) attributes {dimension_semantics = [#tpu.dimension_semantics<parallel>], iteration_bounds = array<i64: 2>, scalar_prefetch = 0 : i64, scratch_operands = 0 : i64, tpu.core_type = #tpu.core_type<tc>, window_params = [{transform_indices = @transform_0, window_bounds = array<i64: 1, 8, 8>}, {transform_indices = @transform_1, window_bounds = array<i64: 1, 8, 17>}, {transform_indices = @transform_2, window_bounds = array<i64: 1, 8, 1>}, {pipeline_mode = #tpu.pipeline_mode<synchronous>, transform_indices = @transform_3, window_bounds = array<i64: 17, 25>}, {pipeline_mode = #tpu.pipeline_mode<synchronous>, transform_indices = @transform_4, window_bounds = array<i64: 25, 6>}, {transform_indices = @transform_5, window_bounds = array<i64: 3>}, {transform_indices = @transform_6, window_bounds = array<i64: 1, 8, 24>}]} {
    %c0 = arith.constant 0 : index
    %c0_0 = arith.constant 0 : index
    %c0_1 = arith.constant 0 : index
    %0 = vector.load %arg1[%c0, %c0_0, %c0_1] : memref<1x8x8xbf16, #tpu.memory_space<vmem>>, vector<1x8x8xbf16>
    %1 = vector.shape_cast %0 : vector<1x8x8xbf16> to vector<8x8xbf16>
    %2 = arith.extf %1 : vector<8x8xbf16> to vector<8x8xf32>
    %c0_2 = arith.constant 0 : index
    %c0_3 = arith.constant 0 : index
    %c0_4 = arith.constant 0 : index
    %3 = vector.load %arg2[%c0_2, %c0_3, %c0_4] : memref<1x8x17xf32, #tpu.memory_space<vmem>>, vector<1x8x17xf32>
    %4 = vector.shape_cast %3 : vector<1x8x17xf32> to vector<8x17xf32>
    %c0_5 = arith.constant 0 : index
    %c0_6 = arith.constant 0 : index
    %c0_7 = arith.constant 0 : index
    %5 = vector.load %arg3[%c0_5, %c0_6, %c0_7] : memref<1x8x1xf32, #tpu.memory_space<vmem>>, vector<1x8x1xf32>
    %6 = vector.shape_cast %5 : vector<1x8x1xf32> to vector<8x1xf32>
    %c0_8 = arith.constant 0 : index
    %c0_9 = arith.constant 0 : index
    %7 = vector.load %arg4[%c0_8, %c0_9] : memref<17x25xf32, #tpu.memory_space<vmem>>, vector<17x25xf32>
    %c0_10 = arith.constant 0 : index
    %c0_11 = arith.constant 0 : index
    %8 = vector.load %arg5[%c0_10, %c0_11] : memref<25x6xf32, #tpu.memory_space<vmem>>, vector<25x6xf32>
    %cst = arith.constant dense<0.000000e+00> : vector<8x25xf32>
    %9 = tpu.matmul %4, %7, %cst {dimension_numbers = #tpu.dot_dimension_numbers<[1], [0], [0], [1], [0, 0, 1, 1], [], []>} : vector<8x17xf32>, vector<17x25xf32>, vector<8x25xf32> -> vector<8x25xf32>
    %cst_12 = arith.constant dense<0.000000e+00> : vector<8x6xf32>
    %10 = tpu.matmul %9, %8, %cst_12 {dimension_numbers = #tpu.dot_dimension_numbers<[1], [0], [0], [1], [0, 0, 1, 1], [], []>} : vector<8x25xf32>, vector<25x6xf32>, vector<8x6xf32> -> vector<8x6xf32>
    %11 = vector.extract_strided_slice %10 {offsets = [0, 0], sizes = [8, 1], strides = [1, 1]} : vector<8x6xf32> to vector<8x1xf32>
    %c0_13 = arith.constant 0 : index
    %12 = memref.load %arg6[%c0_13] : memref<3xf32, #tpu.memory_space<smem>>
    %13 = vector.broadcast %12 : f32 to vector<8x1xf32>
    %14 = arith.addf %11, %13 : vector<8x1xf32>
    %15 = vector.extract_strided_slice %10 {offsets = [0, 3], sizes = [8, 1], strides = [1, 1]} : vector<8x6xf32> to vector<8x1xf32>
    %16 = vector.shape_cast %15 : vector<8x1xf32> to vector<1x8xf32>
    %cst_14 = arith.constant dense<0xFF800000> : vector<1xf32>
    %17 = vector.multi_reduction <maximumf>, %16, %cst_14 [1] : vector<1x8xf32> to vector<1xf32>
    %18 = vector.shape_cast %17 : vector<1xf32> to vector<1x1xf32>
    %19 = vector.broadcast %18 : vector<1x1xf32> to vector<8x1xf32>
    %20 = arith.addf %14, %19 : vector<8x1xf32>
    %cst_15 = arith.constant 2.000000e-01 : f32
    %21 = vector.broadcast %cst_15 : f32 to vector<8x1xf32>
    %22 = arith.mulf %21, %20 : vector<8x1xf32>
    %23 = arith.maximumf %20, %22 : vector<8x1xf32>
    %24 = vector.broadcast %14 : vector<8x1xf32> to vector<8x8xf32>
    %25 = vector.broadcast %16 : vector<1x8xf32> to vector<8x8xf32>
    %26 = arith.addf %24, %25 : vector<8x8xf32>
    %cst_16 = arith.constant 2.000000e-01 : f32
    %27 = vector.broadcast %cst_16 : f32 to vector<8x8xf32>
    %28 = arith.mulf %27, %26 : vector<8x8xf32>
    %29 = arith.maximumf %26, %28 : vector<8x8xf32>
    %30 = vector.broadcast %23 : vector<8x1xf32> to vector<8x8xf32>
    %31 = arith.subf %29, %30 : vector<8x8xf32>
    %32 = math.exp %31 : vector<8x8xf32>
    %33 = arith.mulf %32, %2 : vector<8x8xf32>
    %cst_17 = arith.constant dense<0.000000e+00> : vector<8x25xf32>
    %34 = tpu.matmul %33, %9, %cst_17 {dimension_numbers = #tpu.dot_dimension_numbers<[1], [0], [0], [1], [0, 0, 1, 1], [], []>} : vector<8x8xf32>, vector<8x25xf32>, vector<8x25xf32> -> vector<8x25xf32>
    %35 = vector.extract_strided_slice %34 {offsets = [0, 24], sizes = [8, 1], strides = [1, 1]} : vector<8x25xf32> to vector<8x1xf32>
    %36 = arith.addf %35, %6 : vector<8x1xf32>
    %37 = vector.extract_strided_slice %34 {offsets = [0, 0], sizes = [8, 8], strides = [1, 1]} : vector<8x25xf32> to vector<8x8xf32>
    %38 = tpu.reciprocal %36 : vector<8x1xf32> -> vector<8x1xf32>
    %39 = vector.broadcast %38 : vector<8x1xf32> to vector<8x8xf32>
    %40 = arith.mulf %37, %39 : vector<8x8xf32>
    %c0_18 = arith.constant 0 : index
    %c0_19 = arith.constant 0 : index
    %c0_20 = arith.constant 0 : index
    %41 = vector.load %arg7[%c0_18, %c0_19, %c0_20] : memref<1x8x24xf32, #tpu.memory_space<vmem>>, vector<1x8x8xf32>
    %42 = vector.shape_cast %41 : vector<1x8x8xf32> to vector<8x8xf32>
    %43 = vector.shape_cast %40 : vector<8x8xf32> to vector<1x8x8xf32>
    tpu.vector_store %arg7[%c0_18, %c0_19, %c0_20], %43 {strides = array<i32>} : memref<1x8x24xf32, #tpu.memory_space<vmem>>, vector<1x8x8xf32>,
    %44 = vector.extract_strided_slice %10 {offsets = [0, 1], sizes = [8, 1], strides = [1, 1]} : vector<8x6xf32> to vector<8x1xf32>
    %c1 = arith.constant 1 : index
    %45 = memref.load %arg6[%c1] : memref<3xf32, #tpu.memory_space<smem>>
    %46 = vector.broadcast %45 : f32 to vector<8x1xf32>
    %47 = arith.addf %44, %46 : vector<8x1xf32>
    %48 = vector.extract_strided_slice %10 {offsets = [0, 4], sizes = [8, 1], strides = [1, 1]} : vector<8x6xf32> to vector<8x1xf32>
    %49 = vector.shape_cast %48 : vector<8x1xf32> to vector<1x8xf32>
    %cst_21 = arith.constant dense<0xFF800000> : vector<1xf32>
    %50 = vector.multi_reduction <maximumf>, %49, %cst_21 [1] : vector<1x8xf32> to vector<1xf32>
    %51 = vector.shape_cast %50 : vector<1xf32> to vector<1x1xf32>
    %52 = vector.broadcast %51 : vector<1x1xf32> to vector<8x1xf32>
    %53 = arith.addf %47, %52 : vector<8x1xf32>
    %cst_22 = arith.constant 2.000000e-01 : f32
    %54 = vector.broadcast %cst_22 : f32 to vector<8x1xf32>
    %55 = arith.mulf %54, %53 : vector<8x1xf32>
    %56 = arith.maximumf %53, %55 : vector<8x1xf32>
    %57 = vector.broadcast %47 : vector<8x1xf32> to vector<8x8xf32>
    %58 = vector.broadcast %49 : vector<1x8xf32> to vector<8x8xf32>
    %59 = arith.addf %57, %58 : vector<8x8xf32>
    %cst_23 = arith.constant 2.000000e-01 : f32
    %60 = vector.broadcast %cst_23 : f32 to vector<8x8xf32>
    %61 = arith.mulf %60, %59 : vector<8x8xf32>
    %62 = arith.maximumf %59, %61 : vector<8x8xf32>
    %63 = vector.broadcast %56 : vector<8x1xf32> to vector<8x8xf32>
    %64 = arith.subf %62, %63 : vector<8x8xf32>
    %65 = math.exp %64 : vector<8x8xf32>
    %66 = arith.mulf %65, %2 : vector<8x8xf32>
    %cst_24 = arith.constant dense<0.000000e+00> : vector<8x25xf32>
    %67 = tpu.matmul %66, %9, %cst_24 {dimension_numbers = #tpu.dot_dimension_numbers<[1], [0], [0], [1], [0, 0, 1, 1], [], []>} : vector<8x8xf32>, vector<8x25xf32>, vector<8x25xf32> -> vector<8x25xf32>
    %68 = vector.extract_strided_slice %67 {offsets = [0, 24], sizes = [8, 1], strides = [1, 1]} : vector<8x25xf32> to vector<8x1xf32>
    %69 = arith.addf %68, %6 : vector<8x1xf32>
    %70 = vector.extract_strided_slice %67 {offsets = [0, 8], sizes = [8, 8], strides = [1, 1]} : vector<8x25xf32> to vector<8x8xf32>
    %71 = tpu.reciprocal %69 : vector<8x1xf32> -> vector<8x1xf32>
    %72 = vector.broadcast %71 : vector<8x1xf32> to vector<8x8xf32>
    %73 = arith.mulf %70, %72 : vector<8x8xf32>
    %c0_25 = arith.constant 0 : index
    %c0_26 = arith.constant 0 : index
    %c8 = arith.constant 8 : index
    %74 = vector.load %arg7[%c0_25, %c0_26, %c8] : memref<1x8x24xf32, #tpu.memory_space<vmem>>, vector<1x8x8xf32>
    %75 = vector.shape_cast %74 : vector<1x8x8xf32> to vector<8x8xf32>
    %76 = vector.shape_cast %73 : vector<8x8xf32> to vector<1x8x8xf32>
    tpu.vector_store %arg7[%c0_25, %c0_26, %c8], %76 {strides = array<i32>} : memref<1x8x24xf32, #tpu.memory_space<vmem>>, vector<1x8x8xf32>,
    %77 = vector.extract_strided_slice %10 {offsets = [0, 2], sizes = [8, 1], strides = [1, 1]} : vector<8x6xf32> to vector<8x1xf32>
    %c2 = arith.constant 2 : index
    %78 = memref.load %arg6[%c2] : memref<3xf32, #tpu.memory_space<smem>>
    %79 = vector.broadcast %78 : f32 to vector<8x1xf32>
    %80 = arith.addf %77, %79 : vector<8x1xf32>
    %81 = vector.extract_strided_slice %10 {offsets = [0, 5], sizes = [8, 1], strides = [1, 1]} : vector<8x6xf32> to vector<8x1xf32>
    %82 = vector.shape_cast %81 : vector<8x1xf32> to vector<1x8xf32>
    %cst_27 = arith.constant dense<0xFF800000> : vector<1xf32>
    %83 = vector.multi_reduction <maximumf>, %82, %cst_27 [1] : vector<1x8xf32> to vector<1xf32>
    %84 = vector.shape_cast %83 : vector<1xf32> to vector<1x1xf32>
    %85 = vector.broadcast %84 : vector<1x1xf32> to vector<8x1xf32>
    %86 = arith.addf %80, %85 : vector<8x1xf32>
    %cst_28 = arith.constant 2.000000e-01 : f32
    %87 = vector.broadcast %cst_28 : f32 to vector<8x1xf32>
    %88 = arith.mulf %87, %86 : vector<8x1xf32>
    %89 = arith.maximumf %86, %88 : vector<8x1xf32>
    %90 = vector.broadcast %80 : vector<8x1xf32> to vector<8x8xf32>
    %91 = vector.broadcast %82 : vector<1x8xf32> to vector<8x8xf32>
    %92 = arith.addf %90, %91 : vector<8x8xf32>
    %cst_29 = arith.constant 2.000000e-01 : f32
    %93 = vector.broadcast %cst_29 : f32 to vector<8x8xf32>
    %94 = arith.mulf %93, %92 : vector<8x8xf32>
    %95 = arith.maximumf %92, %94 : vector<8x8xf32>
    %96 = vector.broadcast %89 : vector<8x1xf32> to vector<8x8xf32>
    %97 = arith.subf %95, %96 : vector<8x8xf32>
    %98 = math.exp %97 : vector<8x8xf32>
    %99 = arith.mulf %98, %2 : vector<8x8xf32>
    %cst_30 = arith.constant dense<0.000000e+00> : vector<8x25xf32>
    %100 = tpu.matmul %99, %9, %cst_30 {dimension_numbers = #tpu.dot_dimension_numbers<[1], [0], [0], [1], [0, 0, 1, 1], [], []>} : vector<8x8xf32>, vector<8x25xf32>, vector<8x25xf32> -> vector<8x25xf32>
    %101 = vector.extract_strided_slice %100 {offsets = [0, 24], sizes = [8, 1], strides = [1, 1]} : vector<8x25xf32> to vector<8x1xf32>
    %102 = arith.addf %101, %6 : vector<8x1xf32>
    %103 = vector.extract_strided_slice %100 {offsets = [0, 16], sizes = [8, 8], strides = [1, 1]} : vector<8x25xf32> to vector<8x8xf32>
    %104 = tpu.reciprocal %102 : vector<8x1xf32> -> vector<8x1xf32>
    %105 = vector.broadcast %104 : vector<8x1xf32> to vector<8x8xf32>
    %106 = arith.mulf %103, %105 : vector<8x8xf32>
    %c0_31 = arith.constant 0 : index
    %c0_32 = arith.constant 0 : index
    %c16 = arith.constant 16 : index
    %107 = vector.load %arg7[%c0_31, %c0_32, %c16] : memref<1x8x24xf32, #tpu.memory_space<vmem>>, vector<1x8x8xf32>
    %108 = vector.shape_cast %107 : vector<1x8x8xf32> to vector<8x8xf32>
    %109 = vector.shape_cast %106 : vector<8x8xf32> to vector<1x8x8xf32>
    tpu.vector_store %arg7[%c0_31, %c0_32, %c16], %109 {strides = array<i32>} : memref<1x8x24xf32, #tpu.memory_space<vmem>>, vector<1x8x8xf32>,
    return
  }
  func.func @transform_0(%arg0: i32) -> (i32, i32, i32) {
    %c0_i32 = arith.constant 0 : i32
    %c0_i32_0 = arith.constant 0 : i32
    %c0_i32_1 = arith.constant 0 : i32
    return %arg0, %c0_i32, %c0_i32_0 : i32, i32, i32
  }
  func.func @transform_1(%arg0: i32) -> (i32, i32, i32) {
    %c0_i32 = arith.constant 0 : i32
    %c0_i32_0 = arith.constant 0 : i32
    %c0_i32_1 = arith.constant 0 : i32
    return %arg0, %c0_i32, %c0_i32_0 : i32, i32, i32
  }
  func.func @transform_2(%arg0: i32) -> (i32, i32, i32) {
    %c0_i32 = arith.constant 0 : i32
    %c0_i32_0 = arith.constant 0 : i32
    %c0_i32_1 = arith.constant 0 : i32
    return %arg0, %c0_i32, %c0_i32_0 : i32, i32, i32
  }
  func.func @transform_3(%arg0: i32) -> (i32, i32) {
    %c0_i32 = arith.constant 0 : i32
    %c0_i32_0 = arith.constant 0 : i32
    %c0_i32_1 = arith.constant 0 : i32
    return %c0_i32, %c0_i32_0 : i32, i32
  }
  func.func @transform_4(%arg0: i32) -> (i32, i32) {
    %c0_i32 = arith.constant 0 : i32
    %c0_i32_0 = arith.constant 0 : i32
    %c0_i32_1 = arith.constant 0 : i32
    return %c0_i32, %c0_i32_0 : i32, i32
  }
  func.func @transform_5(%arg0: i32) -> i32 {
    %c0_i32 = arith.constant 0 : i32
    %c0_i32_0 = arith.constant 0 : i32
    return %c0_i32 : i32
  }
  func.func @transform_6(%arg0: i32) -> (i32, i32, i32) {
    %c0_i32 = arith.constant 0 : i32
    %c0_i32_0 = arith.constant 0 : i32
    %c0_i32_1 = arith.constant 0 : i32
    return %arg0, %c0_i32, %c0_i32_0 : i32, i32, i32
  }
}

</mosaic_0001>

<bundles_post_ra>
// kernel: tpu_custom_call.1
= control target key start
LH: loop header
LB: loop body
LE: loop exit
PB: predicated region body
PF: predicated region fallthrough
CT: control target
= control target key end

     0   :  { %11 = vsyncpa [#allocation4], 0  ;;  %s1457_s0 = inlined_call_operand.vmem [shape: bf16[2,8,8], index: 0, kind: input, shape index: {}]   ;;  %s1458_s1 = inlined_call_operand.vmem [shape: f32[2,8,17], index: 1, kind: input, shape index: {}]   ;;  %s1459_s2 = inlined_call_operand.vmem [shape: f32[2,8,1], index: 2, kind: input, shape index: {}]   ;;  %s1460_s3 = inlined_call_operand.vmem [shape: f32[17,25], index: 3, kind: input, shape index: {}]   ;;  %s1461_s4 = inlined_call_operand.vmem [shape: f32[25,6], index: 4, kind: input, shape index: {}]   ;;  %s1462_s5 = inlined_call_operand.vmem [shape: f32[3], index: 5, kind: input, shape index: {}]   ;;  %s1463_s6 = inlined_call_operand.hbm [shape: f32[2,8,24], index: 6, kind: output, shape index: {}]  }
   0x1   :  { %12 = vsyncpa [#allocation3], 0 }
   0x2   :  { %14 = vsyncpa [#allocation3 + $0x1], 0  ;;  %s1280_s21 = smov 0   ;;  %s1282_s22 = smov 0  }
   0x3   :  { %s1284_s23 = smov 0   ;;  %s1286_s24 = smov 0  }
   0x4 LB: > { %s1301_s25 = sadd.s32 4294967295, %s1228_s24   ;;  %s979_s26 = sadd.s32 4294967294, %s1228_s24   ;;  %s1228_s24 = sphi %s1286_s24, %s1470_s24   ;;  %s1224_s23 = sphi %s1284_s23, %s1469_s23   ;;  %s1220_s22 = sphi %s1282_s22, %s1468_s22   ;;  %s1216_s21 = sphi %s1280_s21, %s1467_s21  }
   0x5   : > { %s1305_s27 = sadd.s32 1, %s1228_s24   ;;  %s168_s28 = sadd.s32 1, %s1224_s23 }
   0x6   : > { %s165_s29 = ssub.s32 %s1228_s24, %s1305_s27  ;;  %p178_p0 = scmp.ne.s32.totalorder %s1224_s23, %s1220_s22 }
   0x7   : > { %p166_p1 = scmp.eq.s32.totalorder %s165_s29, 0  ;;  %p179_p2 = scmp.eq.s32.totalorder %s1301_s25, 1 }
   0x8   : > { %p184_p3 = scmp.ne.s32.totalorder %s1220_s22, %s1216_s21  ;;  %p185_p4 = scmp.eq.s32.totalorder %s979_s26, 1 }
   0x9   : > { %s1316_s30 = scalar_select %p166_p1, %s1224_s23, %s168_s28  }
   0xa   : > { %p1318_p5 = por %p179_p2, %p178_p0  ;;  %p1322_p6 = por %p185_p4, %p184_p3 }
   0xb   : > { %p980_p7 = scmp.ge.s32.totalorder %s1228_s24, 1  ;;  %p192_p8 = scmp.lt.s32.totalorder %s1228_s24, 3 }
   0xc   : > { %p1076_p9 = scmp.eq.s32.totalorder %s1301_s25, 0  ;;  %s211_s12 = sshll.u32 %s1462_s5, 4  ;;  %s212_s12 = int_to_ptr.vmem [resolvable:$true] %s211_s12 }
   0xd   : > { %p1329_p10 = pnand %p980_p7, %p192_p8  ;;  %s1147_s13 = scalar_lea.vmem %s212_s12, 16 }
   0xe   : > { %p1148_p13 = scmp.ne.s32.totalorder %s212_s12, %s1147_s13  ;;  %p1155_p3 = scmp.lt.s32.totalorder %s212_s12, %s212_s12 }
   0xf   : > { %p1068_p11 = pneg %p1329_p10  ;;  %p1156_p4 = scmp.lt.s32.totalorder %s1147_s13, %s1147_s13 }
  0x11   : > { %p1069_p12 = pnand %p1076_p9, %p1068_p11  ;;  %p1157_p7 = por %p1156_p4, %p1155_p3 }
  0x13   : > { %p1149_p0 = pneg %p1069_p12 }
  0x15   : > { %p1150_p1 = pnand %p1149_p0, %p1148_p13 }
  0x17   : > { %p1151_p2 = pneg %p1150_p1 }
  0x19   : > { %p1158_p8 = pnand %p1157_p7, %p1151_p2 }
  0x1b   : > { %1161 = shalt.err (!%p1158_p8)
}
  0x1c   : > { %s1230_s14 = smov [#allocation2]   ;;  %245 = sbr.rel (%p1329_p10) target bundleno = 1123 (0x463), region = 44 }
  0x1d   : > { %1071 = dma.vmem_to_smem (!%p1069_p12), %s212_s12, 16, %s1230_s14, [#allocation4]  }
  0x23   : > { %1207 = dma.done.wait (%p1076_p9), [#allocation4], 16  }
  0x24   : > { %1209 = vsyncadd (%p1076_p9), [#allocation4], 4294967280 }
  0x25   : > { %251 = sfence }
  0x26   : > { %v299_v0 = vld [vmem:[%s1460_s3] sm:$0xff]  ;;  %v300_v1 = vld [vmem:[%s1460_s3 + $0x8] sm:$0xff]  ;;  %v1231_v2 = vmov 0.0|0.0   ;;  %p283_p10 = scmp.lt.s32.totalorder %s1301_s25, 1  ;;  %vm1232_vm0 = vmmov 0   ;;  %v1233_v6 = vmov 0.0  }
  0x27   : > { %1052 = vmatprep.subr.bf16.mxu0 %v1231_v2  ;;  %v1053_v3 = vpack.c.bf16 %v300_v1, %v299_v0  ;;  %1055 = vmatprep.subr.bf16.mxu1 %v1231_v2  ;;  %v302_v4 = vld [vmem:[%s1461_s4] sm:$0xff]  ;;  %v303_v5 = vld [vmem:[%s1461_s4 + $0x8] sm:$0xff]  ;;  %v304_v8 = vld [vmem:[%s1461_s4 + $0x10] sm:$0xff]  ;;  %vm310_vm1 = vcmask 1040384   ;;  %vm306_vm2 = vcmask 138240   ;;  %vm1234_vm3 = vmmov 1  }
  0x28   : > { %1023 = vmatprep.mubr.msk.f32.mxu0 %vm1232_vm0, %v1233_v6  ;;  %v1056_v7 = vpack.c.bf16 %v303_v5, %v302_v4  ;;  %v305_v9 = vld [vmem:[%s1461_s4 + $0x18] sm:$0x1]  ;;  %1034 = vmatprep.mubr.msk.f32.mxu1 %vm1232_vm0, %v1233_v6  ;;  %s1370_s12 = scalar_select %p283_p10, %s1301_s25, 1  ;;  %v301_v10 = vld [vmem:[%s1460_s3 + $0x10] sm:$0x1]  ;;  %vm1060_vm4 = vmpackc.low %vm310_vm1, %vm1234_vm3  ;;  %vm384_vm5 = vcmask 203776   ;;  %v488_v0 = vlaneseq }
  0x29   : > { %1054 = vmatpush3.bf16.msra.mxu0 %v1053_v3  ;;  %v1059_v11 = vpack.c.bf16 %v305_v9, %v304_v8  ;;  %v1235_v15 = vmov 3   ;;  %v1236_v16 = vmov 0   ;;  %vm741_vm6 = vcmask 48168   ;;  %s461_s19 = sld [smem:[#allocation2]]  ;;  %s1237_s20 = smov 125  }
  0x2a   : > { %1021 = vmatprep.subr.mxu0 %v1233_v6  ;;  %1057 = vmatpush3.bf16.msra.mxu1 %v1056_v7  ;;  %s987_s15 = sshll.u32 %s1370_s12, 3  ;;  %vm464_vm7 = vcmask 31768   ;;  %vm609_vm8 = vcmask 39968   ;;  %s994_s26 = sld [smem:[#allocation2 + $0x1]]  ;;  %v1238_v42 = vmov 4   ;;  %v1239_v45 = vmov 1  }
  0x2b   : > { %1058 = vmatprep.subr.bf16.mxu1 %v1231_v2  ;;  %s290_s18 = scalar_lea.vmem %s1458_s1, %s987_s15  ;;  %1125 = vset.pattern.permute.xlu1 %v1235_v15  ;;  %s996_s28 = sld [smem:[#allocation2 + $0x2]]  ;;  %v1240_v46 = vmov 5   ;;  %v1241_v49 = vmov 2   ;;  %v489_v1 = vand.u32 127, %v488_v0  ;;  %v491_v2 = vshrl.u32 %v488_v0, 7 }
  0x2c   : > { %v297_v12 = vld [vmem:[%s290_s18] sm:$0xff]  ;;  %1126 = vset.pattern.permute.xlu0 %v1236_v16  ;;  %s294_s10 = scalar_lea.vmem %s1459_s2, %s987_s15  ;;  %s1242_s11 = smov 24   ;;  %vm519_vm9 = vcmask 64512   ;;  %vm736_vm10 = vcmask 130112   ;;  %vm868_vm11 = vcmask 195712  }
  0x2d   : > { %1022 = vmatpush3.msk.msra.mxu0 %vm310_vm1, %v301_v10  ;;  %v298_v62 = vld [vmem:[%s294_s10] sm:$0xff]  ;;  %v492_v4 = vsub.s32 %v489_v1, %v491_v2  ;;  %s986_s13 = sshll.u32 %s1370_s12, 2  ;;  %s280_s12 = sand.u32 1, %s1220_s22  }
  0x2e   : > { %1024 = vmatmul.mubr.msk.f32.vlgmr.msra.gmra.mrb[0].mxu0 %vm306_vm2, %v297_v12  ;;  %1061 = vmatpush3.bf16.msk.msra.mxu1 %vm1060_vm4, %v1059_v11  ;;  %s286_s16 = scalar_lea.vmem %s1457_s0, %s986_s13  ;;  %s985_s17 = sshll.u32 %s280_s12, 3 }
  0x2f   : > { %1037 = vmatprep.subr.mxu0 %v1233_v6  ;;  %1042 = vmatprep.subr.mxu1 %v1233_v6  ;;  %v462_v40 = vstv %s461_s19  ;;  %s282_s18 = scalar_lea.vmem [#allocation5], %s985_s17  ;;  %s999_s19 = sshll.u32 %s1301_s25, 7 }
  0x30   : > { %1039 = vmatprep.mubr.msk.f32.mxu0 %vm1232_vm0, %v1233_v6  ;;  %v607_v43 = vstv %s994_s26  ;;  %s1415_s29 = scalar_lea.hbm %s1463_s6, %s999_s19  ;;  %s871_s25 = scalar_lea.sflag [#allocation3], %s280_s12 }
  0x31   : > { %v739_v47 = vstv %s996_s28  ;;  %s1244_s10 = smov [#allocation5]  }
 0x101   : > { %v1386_v13 = vpop.f32.mrb[0].mxu0 }
 0x102   : > { %v1025_v14 = vpop.f32.mrb[1].mxu0  ;;  %1035 = vmatmul.mubr.msk.f32.vlgmr.msra.gmra.mrb[0].mxu1 %vm384_vm5, %v1386_v13  ;;  %1038 = vmatpush3.msra.mxu0 %v1386_v13 }
 0x103   : > { %1043 = vmatpush3.msra.mxu1 %v1386_v13  ;;  %1047 = vmatprep.subr.mxu0 %v1233_v6 }
 0x104   : > { %1044 = vmatprep.mubr.msk.f32.mxu1 %vm1232_vm0, %v1233_v6 }
 0x1d5   : > { %v457_v17 = vpop.f32.mrb[0].mxu1 }
 0x1d6   : > { %v1036_v18 = vpop.f32.mrb[1].mxu1  ;;  %v742_v19 = vsel %vm741_vm6, %v457_v17, -inf  ;;  %v465_v20 = vsel %vm464_vm7, %v457_v17, -inf  ;;  %v610_v21 = vsel %vm609_vm8, %v457_v17, -inf  ;;  %v463_v41 = vadd.f32 %v462_v40, %v457_v17 }
 0x1d7   : > { %v743_v22 = vrot.slane %v742_v19, 4  ;;  %v466_v23 = vrot.slane %v465_v20, 4  ;;  %v611_v24 = vrot.slane %v610_v21, 4  ;;  %v608_v44 = vadd.f32 %v607_v43, %v457_v17 }
 0x1d8   : > { %v740_v48 = vadd.f32 %v739_v47, %v457_v17  ;;  %v1243_v40 = vmov 24  }
 0x1d9   : > { %v744_v25 = vmax.f32 %v742_v19, %v743_v22  ;;  %v467_v26 = vmax.f32 %v465_v20, %v466_v23  ;;  %v612_v27 = vmax.f32 %v610_v21, %v611_v24 }
 0x1db   : > { %v745_v28 = vrot.slane %v744_v25, 2  ;;  %v468_v29 = vrot.slane %v467_v26, 2  ;;  %v613_v30 = vrot.slane %v612_v27, 2 }
 0x1dd   : > { %v746_v31 = vmax.f32 %v744_v25, %v745_v28  ;;  %v469_v32 = vmax.f32 %v467_v26, %v468_v29  ;;  %v614_v33 = vmax.f32 %v612_v27, %v613_v30 }
 0x1df   : > { %v747_v34 = vrot.slane %v746_v31, 1  ;;  %v470_v35 = vrot.slane %v469_v32, 1  ;;  %v615_v38 = vrot.slane %v614_v33, 1 }
 0x1e1   : > { %v748_v36 = vmax.f32 %v746_v31, %v747_v34  ;;  %v471_v37 = vmax.f32 %v469_v32, %v470_v35  ;;  %v616_v39 = vmax.f32 %v614_v33, %v615_v38  ;;  %v295_v32 = vld [vmem:[%s286_s16] sm:$0xf] }
 0x1e2   : > { %v296_v33 = vunpack.c.l.bf16 %v295_v32 }
 0x1e3   : > { %750 = vrot.lane.b32.xlu1 %v748_v36, %s1237_s20  ;;  %473 = vrot.lane.b32.xlu0 %v471_v37, %s1237_s20 }
 0x1e7   : > { %486 = vperm.xlu1 %1125, %v457_v17   ;;  %618 = vrot.lane.b32.xlu0 %v616_v39, %s1237_s20  ;;  %s884_s20 = sshll.u32 %s282_s18, 4  ;;  %s1417_s20 = int_to_ptr.vmem [resolvable:$true] %s884_s20 }
 0x1e8   : > { %s1162_s9 = scalar_lea.vmem %s1417_s20, 128 }
 0x1e9   : > { %p1163_p9 = scmp.ne.s32.totalorder %s1417_s20, %s1162_s9 }
 0x1eb   : > { %1127 = vset.pattern.permute.xlu1 %v1238_v42  ;;  %481 = vperm.xlu0 %1126, %v463_v41   ;;  %p1164_p11 = pnand %p1163_p9, %p1318_p5 }
 0x1ec   : > { %630 = vperm.xlu1 %1127, %v457_v17  }
 0x1ed   : > { %p1165_p12 = pneg %p1164_p11 }
 0x1ef   : > { %1129 = vset.pattern.permute.xlu0 %v1239_v45 }
 0x1f0   : > { %1128 = vset.pattern.permute.xlu1 %v1240_v46  ;;  %626 = vperm.xlu0 %1129, %v608_v44  }
 0x1f1   : > { %762 = vperm.xlu1 %1128, %v457_v17  }
 0x1f5   : > { %1130 = vset.pattern.permute.xlu1 %v1241_v49 }
 0x1f6   : > { %758 = vperm.xlu1 %1130, %v740_v48  }
 0x1fa   : > { %1131 = vset.pattern.permute.xlu1 %v1236_v16 }
 0x255   : > { %v751_v50 = vpop.permute.xlu1 %750  ;;  %v474_v51 = vpop.permute.xlu0 %473 }
 0x256   : > { %v476_v52 = vadd.f32 %v474_v51, %v463_v41  ;;  %v753_v53 = vadd.f32 %v751_v50, %v740_v48 }
 0x258   : > { %v477_v54 = vmul.f32 0.2, %v476_v52  ;;  %v754_v58 = vmul.f32 0.2, %v753_v53 }
 0x259   : > { %v619_v55 = vpop.permute.xlu0 %618 }
 0x25a   : > { %v478_v56 = vmax.f32 %v476_v52, %v477_v54  ;;  %v621_v57 = vadd.f32 %v619_v55, %v608_v44  ;;  %v755_v61 = vmax.f32 %v753_v53, %v754_v58 }
 0x25c   : > { %v622_v59 = vmul.f32 0.2, %v621_v57  ;;  %512 = vperm.xlu1 %1131, %v478_v56  }
 0x25e   : > { %v623_v60 = vmax.f32 %v621_v57, %v622_v59 }
 0x260   : > { %648 = vperm.xlu0 %1129, %v623_v60   ;;  %1132 = vset.pattern.permute.xlu1 %v1241_v49 }
 0x261   : > { %780 = vperm.xlu1 %1132, %v755_v61  }
 0x264   : > { %594 = vrot.lane.b32.xlu0 %v298_v62, %s1242_s11  ;;  %s1166_s11 = sshll.u32 %s1244_s10, 4  ;;  %s1167_s11 = int_to_ptr.vmem [resolvable:$false] %s1166_s11 }
 0x265   : > { %1133 = vset.pattern.permute.xlu1 %v1243_v40  ;;  %1134 = vset.pattern.permute.xlu0 %v1243_v40  ;;  %s1168_s13 = scalar_lea.vmem %s1167_s11, 256  ;;  %p1169_p13 = scmp.lt.s32.totalorder %s1417_s20, %s1167_s11 }
 0x266   : > { %v487_v63 = vpop.permute.xlu1 %486  ;;  %p1170_p0 = scmp.lt.s32.totalorder %s1168_s13, %s1162_s9 }
 0x267   : > { %v493_v8 = vrot.slane %v487_v63, %v492_v4 }
 0x268   : > { %p1171_p1 = por %p1170_p0, %p1169_p13 }
 0x26a   : > { %v482_v5 = vpop.permute.xlu0 %481  ;;  %p1172_p2 = pnand %p1171_p1, %p1165_p12 }
 0x26b   : > { %v631_v3 = vpop.permute.xlu1 %630  ;;  %v507_v9 = vadd.f32 %v493_v8, %v482_v5 }
 0x26c   : > { %v635_v11 = vrot.slane %v631_v3, %v492_v4 }
 0x26d   : > { %v508_v15 = vmul.f32 0.2, %v507_v9 }
 0x26f   : > { %v627_v10 = vpop.permute.xlu0 %626  ;;  %v509_v19 = vmax.f32 %v507_v9, %v508_v15 }
 0x270   : > { %v763_v7 = vpop.permute.xlu1 %762  ;;  %v643_v16 = vadd.f32 %v635_v11, %v627_v10 }
 0x271   : > { %v767_v14 = vrot.slane %v763_v7, %v492_v4 }
 0x272   : > { %v644_v18 = vmul.f32 0.2, %v643_v16 }
 0x274   : > { %v645_v24 = vmax.f32 %v643_v16, %v644_v18 }
 0x275   : > { %v759_v12 = vpop.permute.xlu1 %758 }
 0x276   : > { %v775_v17 = vadd.f32 %v767_v14, %v759_v12 }
 0x278   : > { %v776_v20 = vmul.f32 0.2, %v775_v17 }
 0x27a   : > { %v777_v26 = vmax.f32 %v775_v17, %v776_v20 }
 0x2db   : > { %v513_v21 = vpop.permute.xlu1 %512 }
 0x2dc   : > { %v515_v22 = vsub.f32 %v509_v19, %v513_v21 }
 0x2de   : > { %v516_v23 = vmul.f32 1.442695, %v515_v22 }
 0x2df   : > { %v649_v25 = vpop.permute.xlu0 %648 }
 0x2e0   : > { %1135 = vpow2.f32 %v516_v23  ;;  %v651_v27 = vsub.f32 %v645_v24, %v649_v25  ;;  %v781_v28 = vpop.permute.xlu1 %780 }
 0x2e1   : > { %v783_v29 = vsub.f32 %v777_v26, %v781_v28 }
 0x2e2   : > { %v652_v30 = vmul.f32 1.442695, %v651_v27 }
 0x2e3   : > { %v784_v31 = vmul.f32 1.442695, %v783_v29  ;;  %v595_v41 = vpop.permute.xlu0 %594 }
 0x2e4   : > { %1137 = vpow2.f32 %v652_v30 }
 0x2e5   : > { %1139 = vpow2.f32 %v784_v31 }
 0x2ea   : > { %v1136_v34 = vpop.eup %1135 }
 0x2eb   : > { %v518_v35 = vmul.f32 %v1136_v34, %v296_v33 }
 0x2ed   : > { %1040 = vmatmul.mubr.msk.f32.vlgmr.msra.gmra.mrb[2].mxu0 %vm519_vm9, %v518_v35 }
 0x2ee   : > { %v1138_v36 = vpop.eup %1137  ;;  %1048 = vmatpush3.msra.mxu0 %v1386_v13  ;;  %1049 = vmatprep.mubr.msk.f32.mxu0 %vm1232_vm0, %v1233_v6 }
 0x2ef   : > { %v1140_v37 = vpop.eup %1139  ;;  %v654_v38 = vmul.f32 %v1138_v36, %v296_v33 }
 0x2f0   : > { %v786_v39 = vmul.f32 %v1140_v37, %v296_v33 }
 0x2f1   : > { %1045 = vmatmul.mubr.msk.f32.vlgmr.msra.gmra.mrb[2].mxu1 %vm519_vm9, %v654_v38 }
 0x2f2   : > { %1050 = vmatmul.mubr.msk.f32.vlgmr.msra.gmra.mrb[4].mxu0 %vm519_vm9, %v786_v39 }
 0x3c0   : > { %v589_v42 = vpop.f32.mrb[2].mxu0 }
 0x3c1   : > { %v597_v43 = vadd.f32 %v595_v41, %v589_v42  ;;  %v1041_v44 = vpop.f32.mrb[3].mxu0 }
 0x3c3   : > { %1141 = vrcp.f32 %v597_v43 }
 0x3c4   : > { %v724_v13 = vpop.f32.mrb[2].mxu1 }
 0x3c5   : > { %v728_v45 = vadd.f32 %v724_v13, %v595_v41  ;;  %v1046_v46 = vpop.f32.mrb[3].mxu1  ;;  %v856_v6 = vpop.f32.mrb[4].mxu0 }
 0x3c6   : > { %v860_v47 = vadd.f32 %v856_v6, %v595_v41  ;;  %v1051_v48 = vpop.f32.mrb[5].mxu0 }
 0x3c7   : > { %1143 = vrcp.f32 %v728_v45 }
 0x3c8   : > { %1145 = vrcp.f32 %v860_v47 }
 0x3cd   : > { %v1142_v49 = vpop.eup %1141 }
 0x3ce   : > { %601 = vperm.xlu1 %1133, %v1142_v49  }
 0x3d1   : > { %v1144_v50 = vpop.eup %1143 }
 0x3d2   : > { %v1146_v51 = vpop.eup %1145  ;;  %732 = vperm.xlu0 %1134, %v1144_v50  }
 0x3d3   : > { %864 = vperm.xlu1 %1133, %v1146_v51  }
 0x44d   : > { %v602_v52 = vpop.permute.xlu1 %601 }
 0x44e   : > { %v604_v53 = vmul.f32 %v602_v52, %v589_v42 }
 0x450   : > { %605 = vst.msk [vmem:[%s282_s18] sm:$0xff] %vm519_vm9, %v604_v53 }
 0x451   : > { %v733_v54 = vpop.permute.xlu0 %732 }
 0x452   : > { %v735_v55 = vmul.f32 %v733_v54, %v724_v13  ;;  %v865_v56 = vpop.permute.xlu1 %864 }
 0x453   : > { %v867_v57 = vmul.f32 %v865_v56, %v856_v6 }
 0x454   : > { %737 = vst.msk [vmem:[%s282_s18] sm:$0xff] %vm736_vm10, %v735_v55 }
 0x455   : > { %869 = vst.msk [vmem:[%s282_s18] sm:$0xff] %vm868_vm11, %v867_v57 }
 0x456   : > { %1175 = shalt.err (!%p1172_p2)
}
 0x457   : > { %s1176_s14 = scalar_lea.hbm %s1415_s29, 128  ;;  %s1180_s12 = scalar_lea.hbm %s1463_s6, 256 }
 0x458   : > { %p1177_p3 = scmp.ne.s32.totalorder %s1415_s29, %s1176_s14  ;;  %p1181_p8 = scmp.lt.u32.totalorder %s1415_s29, %s1463_s6 }
 0x459   : > { %p1182_p10 = scmp.lt.u32.totalorder %s1180_s12, %s1176_s14  ;;  %p1184_p11 = scmp.lt.u32.totalorder %s1176_s14, %s1415_s29 }
 0x45a   : > { %p1178_p4 = pnand %p1177_p3, %p1318_p5 }
 0x45b   : > { %p1183_p9 = por %p1182_p10, %p1181_p8 }
 0x45c   : > { %p1179_p7 = pneg %p1178_p4 }
 0x45d   : > { %p1185_p12 = por %p1184_p11, %p1183_p9 }
 0x45f   : > { %p1186_p13 = pnand %p1185_p12, %p1179_p7 }
 0x461   : > { %1189 = shalt.err (!%p1186_p13)
}
 0x462   : > { %1066 = dma.vmem_to_hbm [thread:$0]  (%p1318_p5), %s1417_s20, 128, %s1415_s29, %s871_s25  }
 0x463 PF: > { %p1078_p0 = scmp.ge.s32.totalorder %s1228_s24, 2  ;;  %s896_s19 = sand.u32 1, %s1216_s21  }
 0x464   : > { %s897_s26 = scalar_lea.sflag [#allocation3], %s896_s19 }
 0x465   : > { %p1073_p1 = pnand %p1078_p0, %p1322_p6 }
 0x467   : > { %1211 = dma.done.wait (!%p1073_p1), %s897_s26, 128  }
 0x468   : > { %1213 = vsyncadd (!%p1073_p1), %s897_s26, 4294967168  ;;  %p17_p2 = scmp.ge.s32.totalorder %s1305_s27, 4   ;;  %s1467_s21 = smov %s1220_s22 }
 0x469   : > { %s1468_s22 = smov %s1224_s23  ;;  %s1469_s23 = smov %s1316_s30 }
 0x46a   : > { %s1470_s24 = smov %s1305_s27  ;;  %19 = sbr.rel (!%p17_p2) target bundleno = 4 (0x4), region = 90 }
 0x471   :  { %902 = vsyncpa [#allocation3], 1 }
 0x472   :  { %904 = vsyncpa [#allocation3 + $0x1], 1 }
 0x473   :  { %905 = vsyncpa [#allocation4], 1 }
 0x474   :  { %907 = vsyncpa [#allocation4 + $0x1], 1 }

</bundles_post_ra>
